<compile_context>
chip_gen: v5e
topology: v5e:2x2
jax: 0.10.0
libtpu: 0.0.40
codegen_flags: <defaults>
</compile_context>

<pallas_src>
import functools

import jax
import jax.numpy as jnp
from jax.experimental import pallas as pl
from jax.experimental.pallas import tpu as pltpu

ROW_CHUNK = 128        # rows per inner chunk: intermediates stay in vregs
DEFAULT_B_TILE = 1024  # rows per grid step (HBM<->VMEM DMA tile)
MIN_GRID_STEPS = 8     # target grid steps so v7x's 2 TCs both get work


def _round_up(n, m):
    return ((n + m - 1) // m) * m


def mlp_kernel(x_ref, w1_ref, b1_ref, w2_ref, b2_ref, w3_ref, b3_ref, o_ref,
               *, row_chunk):
    # Weights arrive already in bf16 (cast once in the wrapper) and stay
    # VMEM-resident across the whole grid via constant index maps.  Biases f32.
    w1 = w1_ref[...]
    w2 = w2_ref[...]
    w3 = w3_ref[...]
    b1 = b1_ref[...]
    b2 = b2_ref[...]
    b3 = b3_ref[...]

    n_chunks = x_ref.shape[0] // row_chunk  # static

    def chunk(c, carry):
        r = pl.multiple_of(c * row_chunk, row_chunk)
        x = x_ref[pl.ds(r, row_chunk), :].astype(jnp.bfloat16)
        # Linear(5,32) + ReLU   (bf16 MXU operands, f32 accumulate)
        h1 = jnp.dot(x, w1, preferred_element_type=jnp.float32) + b1
        h1 = jnp.maximum(h1, 0.0).astype(jnp.bfloat16)
        # Linear(32,32) + ReLU
        h2 = jnp.dot(h1, w2, preferred_element_type=jnp.float32) + b2
        h2 = jnp.maximum(h2, 0.0).astype(jnp.bfloat16)
        # Linear(32,16)
        f = jnp.dot(h2, w3, preferred_element_type=jnp.float32) + b3
        # L2 normalize along features: rsqrt goes to the EUP (own VLIW slot).
        inv_norm = jax.lax.rsqrt(jnp.sum(f * f, axis=1, keepdims=True))
        o_ref[pl.ds(r, row_chunk), :] = (f * inv_norm).astype(o_ref.dtype)
        return carry

    if n_chunks == 1:
        chunk(0, 0)                                  # straight-line fast path
    else:
        jax.lax.fori_loop(0, n_chunks, chunk, 0, unroll=True)


@functools.partial(jax.jit, static_argnames=("b_tile", "out_dtype"))
def basic_mlp_forward(x, params, *, b_tile=DEFAULT_B_TILE, out_dtype=jnp.float32):
    w1, b1, w2, b2, w3, b3 = params
    B, f_in = x.shape
    out_dim = w3.shape[1]

    # ---- batch tile / grid selection ----------------------------------------
    # Aim for >= MIN_GRID_STEPS grid steps when the batch allows (v7x megacore
    # split + small per-step VMEM), capped at b_tile, floored at 8 rows
    # (sublane granularity).
    bt = min(b_tile, max(8, _round_up(pl.cdiv(B, MIN_GRID_STEPS), 8)))
    if bt >= ROW_CHUNK:
        bt = (bt // ROW_CHUNK) * ROW_CHUNK   # inner chunk loop divides evenly
    row_chunk = min(ROW_CHUNK, bt)
    b_pad = _round_up(B, bt)
    if b_pad != B:
        # Padded rows are computed (NaN-normalized, like PyTorch on a zero row)
        # and sliced off before returning.
        x = jnp.pad(x, ((0, b_pad - B), (0, 0)))

    # ---- explicit VMEM budget ------------------------------------------------
    # x and out tiles are lane-padded to 128 lanes in VMEM (bt*128*4 B each),
    # double-buffered by the pipeline; weights/biases are tiny (<10 KiB).
    tile_bytes = bt * 128 * 4
    vmem_limit = int(min(32 << 20, max(16 << 20, 4 * tile_bytes + (4 << 20))))

    # MXU operands in bf16 (pins precision; native on v6e/v7x, fine on v5e).
    w1_h, w2_h, w3_h = (w.astype(jnp.bfloat16) for w in (w1, w2, w3))

    # Weights/biases: full-array blocks, constant index map -> VMEM-resident.
    def const_spec(a):
        nd = a.ndim
        return pl.BlockSpec(a.shape, lambda i, _nd=nd: (0,) * _nd)

    out = pl.pallas_call(
        functools.partial(mlp_kernel, row_chunk=row_chunk),
        out_shape=jax.ShapeDtypeStruct((b_pad, out_dim), out_dtype),
        grid=(b_pad // bt,),
        in_specs=[
            pl.BlockSpec((bt, f_in), lambda i: (i, 0)),
            const_spec(w1_h), const_spec(b1),
            const_spec(w2_h), const_spec(b2),
            const_spec(w3_h), const_spec(b3),
        ],
        out_specs=pl.BlockSpec((bt, out_dim), lambda i: (i, 0)),
        compiler_params=pltpu.CompilerParams(
            dimension_semantics=("parallel",),   # v7x megacore; neutral on v5e/v6e
            vmem_limit_bytes=vmem_limit,
        ),
    )(x, w1_h, b1, w2_h, b2, w3_h, b3)
    return out[:B]


def init_params(key):
    # PyTorch nn.Linear init: U(-1/sqrt(fan_in), 1/sqrt(fan_in)) for W and b.
    # Weights stored transposed (in, out) so the kernel computes x @ W.
    def linear(key, fan_in, fan_out):
        kw, kb = jax.random.split(key)
        bound = 1.0 / jnp.sqrt(fan_in)
        w = jax.random.uniform(kw, (fan_in, fan_out), jnp.float32, -bound, bound)
        b = jax.random.uniform(kb, (1, fan_out), jnp.float32, -bound, bound)
        return w, b

    k1, k2, k3 = jax.random.split(key, 3)
    w1, b1 = linear(k1, 5, 32)
    w2, b2 = linear(k2, 32, 32)
    w3, b3 = linear(k3, 32, 16)
    return (w1, b1, w2, b2, w3, b3)


def _reference_f32(x, params):
    # Faithful to the PyTorch f32 module.
    w1, b1, w2, b2, w3, b3 = params
    h1 = jnp.maximum(x @ w1 + b1, 0.0)
    h2 = jnp.maximum(h1 @ w2 + b2, 0.0)
    f = h2 @ w3 + b3
    return f / jnp.sqrt(jnp.sum(f * f, axis=1, keepdims=True))


def _reference_bf16_mxu(x, params):
    # Same numerical path as the kernel: bf16 operands, f32 accumulate/VPU math.
    w1, b1, w2, b2, w3, b3 = params
    bf = jnp.bfloat16

    def dot(a, w):
        return jnp.dot(a.astype(bf), w.astype(bf), preferred_element_type=jnp.float32)

    h1 = jnp.maximum(dot(x, w1) + b1, 0.0)
    h2 = jnp.maximum(dot(h1, w2) + b2, 0.0)
    f = dot(h2, w3) + b3
    return f * jax.lax.rsqrt(jnp.sum(f * f, axis=1, keepdims=True))


if __name__ == "__main__":
    key = jax.random.PRNGKey(0)
    kp, k1, k2, k3 = jax.random.split(key, 4)
    params = init_params(kp)

    def check(x, out, name):
        ref_match = _reference_bf16_mxu(x, params)   # structural check (tight)
        ref_f32 = _reference_f32(x, params)          # semantic check vs f32 module
        assert out.shape == ref_f32.shape, f"{name}: shape {out.shape}"
        assert jnp.allclose(out, ref_match, atol=1e-3, rtol=1e-3), \
            f"{name}: mismatch vs bf16-MXU reference"
        assert jnp.allclose(out, ref_f32, atol=3e-2, rtol=3e-2), \
            f"{name}: mismatch vs f32 reference"

    # 1) Small demo batch: single grid step, single inner chunk.
    x1 = jax.random.normal(k1, (8, 5), jnp.float32)
    out1 = jax.block_until_ready(basic_mlp_forward(x1, params))
    check(x1, out1, "B=8")

    # 2) B not a multiple of the tile: multi-step grid + zero-padding path.
    x2 = jax.random.normal(k2, (25, 5), jnp.float32)
    out2 = jax.block_until_ready(basic_mlp_forward(x2, params))
    check(x2, out2, "B=25")

    # 3) Larger batch: 8-step grid, 256-row tile, 2 inner 128-row chunks per
    #    step (exercises the in-kernel fori_loop + padding together).
    x3 = jax.random.normal(k3, (2000, 5), jnp.float32)
    out3 = jax.block_until_ready(basic_mlp_forward(x3, params))
    check(x3, out3, "B=2000")

    print("KERNEL_OK")
</pallas_src>

<mosaic_0001>
module attributes {stable_mosaic.version = 11 : i64} {
  func.func @mlp_kernel(%arg0: i32, %arg1: memref<8x5xf32, #tpu.memory_space<vmem>>, %arg2: memref<5x32xbf16, #tpu.memory_space<vmem>>, %arg3: memref<1x32xf32, #tpu.memory_space<vmem>>, %arg4: memref<32x32xbf16, #tpu.memory_space<vmem>>, %arg5: memref<1x32xf32, #tpu.memory_space<vmem>>, %arg6: memref<32x16xbf16, #tpu.memory_space<vmem>>, %arg7: memref<1x16xf32, #tpu.memory_space<vmem>>, %arg8: memref<8x16xf32, #tpu.memory_space<vmem>>) attributes {dimension_semantics = [#tpu.dimension_semantics<parallel>], iteration_bounds = array<i64: 1>, scalar_prefetch = 0 : i64, scratch_operands = 0 : i64, tpu.core_type = #tpu.core_type<tc>, window_params = [{transform_indices = @transform_0, window_bounds = array<i64: 8, 5>}, {pipeline_mode = #tpu.pipeline_mode<synchronous>, transform_indices = @transform_1, window_bounds = array<i64: 5, 32>}, {pipeline_mode = #tpu.pipeline_mode<synchronous>, transform_indices = @transform_2, window_bounds = array<i64: 1, 32>}, {pipeline_mode = #tpu.pipeline_mode<synchronous>, transform_indices = @transform_3, window_bounds = array<i64: 32, 32>}, {pipeline_mode = #tpu.pipeline_mode<synchronous>, transform_indices = @transform_4, window_bounds = array<i64: 1, 32>}, {pipeline_mode = #tpu.pipeline_mode<synchronous>, transform_indices = @transform_5, window_bounds = array<i64: 32, 16>}, {pipeline_mode = #tpu.pipeline_mode<synchronous>, transform_indices = @transform_6, window_bounds = array<i64: 1, 16>}, {transform_indices = @transform_7, window_bounds = array<i64: 8, 16>}]} {
    %c0 = arith.constant 0 : index
    %c0_0 = arith.constant 0 : index
    %0 = vector.load %arg2[%c0, %c0_0] : memref<5x32xbf16, #tpu.memory_space<vmem>>, vector<5x32xbf16>
    %c0_1 = arith.constant 0 : index
    %c0_2 = arith.constant 0 : index
    %1 = vector.load %arg4[%c0_1, %c0_2] : memref<32x32xbf16, #tpu.memory_space<vmem>>, vector<32x32xbf16>
    %c0_3 = arith.constant 0 : index
    %c0_4 = arith.constant 0 : index
    %2 = vector.load %arg6[%c0_3, %c0_4] : memref<32x16xbf16, #tpu.memory_space<vmem>>, vector<32x16xbf16>
    %c0_5 = arith.constant 0 : index
    %c0_6 = arith.constant 0 : index
    %3 = vector.load %arg3[%c0_5, %c0_6] : memref<1x32xf32, #tpu.memory_space<vmem>>, vector<1x32xf32>
    %c0_7 = arith.constant 0 : index
    %c0_8 = arith.constant 0 : index
    %4 = vector.load %arg5[%c0_7, %c0_8] : memref<1x32xf32, #tpu.memory_space<vmem>>, vector<1x32xf32>
    %c0_9 = arith.constant 0 : index
    %c0_10 = arith.constant 0 : index
    %5 = vector.load %arg7[%c0_9, %c0_10] : memref<1x16xf32, #tpu.memory_space<vmem>>, vector<1x16xf32>
    %c0_i32 = arith.constant 0 : i32
    %6 = tpu.assume_multiple %c0_i32, 8 : i32
    %7 = arith.index_cast %6 : i32 to index
    %c0_11 = arith.constant 0 : index
    %8 = vector.load %arg1[%7, %c0_11] : memref<8x5xf32, #tpu.memory_space<vmem>>, vector<8x5xf32>
    %9 = arith.truncf %8 : vector<8x5xf32> to vector<8x5xbf16>
    %cst = arith.constant dense<0.000000e+00> : vector<8x32xf32>
    %10 = tpu.matmul %9, %0, %cst {dimension_numbers = #tpu.dot_dimension_numbers<[1], [0], [0], [1], [0, 0, 1, 1], [], []>} : vector<8x5xbf16>, vector<5x32xbf16>, vector<8x32xf32> -> vector<8x32xf32>
    %11 = vector.broadcast %3 : vector<1x32xf32> to vector<8x32xf32>
    %12 = arith.addf %10, %11 : vector<8x32xf32>
    %cst_12 = arith.constant 0.000000e+00 : f32
    %13 = vector.broadcast %cst_12 : f32 to vector<8x32xf32>
    %14 = arith.maximumf %12, %13 : vector<8x32xf32>
    %15 = arith.truncf %14 : vector<8x32xf32> to vector<8x32xbf16>
    %cst_13 = arith.constant dense<0.000000e+00> : vector<8x32xf32>
    %16 = tpu.matmul %15, %1, %cst_13 {dimension_numbers = #tpu.dot_dimension_numbers<[1], [0], [0], [1], [0, 0, 1, 1], [], []>} : vector<8x32xbf16>, vector<32x32xbf16>, vector<8x32xf32> -> vector<8x32xf32>
    %17 = vector.broadcast %4 : vector<1x32xf32> to vector<8x32xf32>
    %18 = arith.addf %16, %17 : vector<8x32xf32>
    %cst_14 = arith.constant 0.000000e+00 : f32
    %19 = vector.broadcast %cst_14 : f32 to vector<8x32xf32>
    %20 = arith.maximumf %18, %19 : vector<8x32xf32>
    %21 = arith.truncf %20 : vector<8x32xf32> to vector<8x32xbf16>
    %cst_15 = arith.constant dense<0.000000e+00> : vector<8x16xf32>
    %22 = tpu.matmul %21, %2, %cst_15 {dimension_numbers = #tpu.dot_dimension_numbers<[1], [0], [0], [1], [0, 0, 1, 1], [], []>} : vector<8x32xbf16>, vector<32x16xbf16>, vector<8x16xf32> -> vector<8x16xf32>
    %23 = vector.broadcast %5 : vector<1x16xf32> to vector<8x16xf32>
    %24 = arith.addf %22, %23 : vector<8x16xf32>
    %25 = arith.mulf %24, %24 : vector<8x16xf32>
    %cst_16 = arith.constant dense<0.000000e+00> : vector<8xf32>
    %26 = vector.multi_reduction <add>, %25, %cst_16 [1] : vector<8x16xf32> to vector<8xf32>
    %27 = vector.shape_cast %26 : vector<8xf32> to vector<8x1xf32>
    %28 = math.rsqrt %27 : vector<8x1xf32>
    %29 = vector.broadcast %28 : vector<8x1xf32> to vector<8x16xf32>
    %30 = arith.mulf %24, %29 : vector<8x16xf32>
    %31 = arith.index_cast %6 : i32 to index
    %c0_17 = arith.constant 0 : index
    %32 = vector.load %arg8[%31, %c0_17] : memref<8x16xf32, #tpu.memory_space<vmem>>, vector<8x16xf32>
    tpu.vector_store %arg8[%31, %c0_17], %30 {strides = array<i32>} : memref<8x16xf32, #tpu.memory_space<vmem>>, vector<8x16xf32>,
    return
  }
  func.func @transform_0(%arg0: i32) -> (i32, i32) {
    %c0_i32 = arith.constant 0 : i32
    %c0_i32_0 = arith.constant 0 : i32
    return %arg0, %c0_i32 : i32, i32
  }
  func.func @transform_1(%arg0: i32) -> (i32, i32) {
    %c0_i32 = arith.constant 0 : i32
    %c0_i32_0 = arith.constant 0 : i32
    %c0_i32_1 = arith.constant 0 : i32
    return %c0_i32, %c0_i32_0 : i32, i32
  }
  func.func @transform_2(%arg0: i32) -> (i32, i32) {
    %c0_i32 = arith.constant 0 : i32
    %c0_i32_0 = arith.constant 0 : i32
    %c0_i32_1 = arith.constant 0 : i32
    return %c0_i32, %c0_i32_0 : i32, i32
  }
  func.func @transform_3(%arg0: i32) -> (i32, i32) {
    %c0_i32 = arith.constant 0 : i32
    %c0_i32_0 = arith.constant 0 : i32
    %c0_i32_1 = arith.constant 0 : i32
    return %c0_i32, %c0_i32_0 : i32, i32
  }
  func.func @transform_4(%arg0: i32) -> (i32, i32) {
    %c0_i32 = arith.constant 0 : i32
    %c0_i32_0 = arith.constant 0 : i32
    %c0_i32_1 = arith.constant 0 : i32
    return %c0_i32, %c0_i32_0 : i32, i32
  }
  func.func @transform_5(%arg0: i32) -> (i32, i32) {
    %c0_i32 = arith.constant 0 : i32
    %c0_i32_0 = arith.constant 0 : i32
    %c0_i32_1 = arith.constant 0 : i32
    return %c0_i32, %c0_i32_0 : i32, i32
  }
  func.func @transform_6(%arg0: i32) -> (i32, i32) {
    %c0_i32 = arith.constant 0 : i32
    %c0_i32_0 = arith.constant 0 : i32
    %c0_i32_1 = arith.constant 0 : i32
    return %c0_i32, %c0_i32_0 : i32, i32
  }
  func.func @transform_7(%arg0: i32) -> (i32, i32) {
    %c0_i32 = arith.constant 0 : i32
    %c0_i32_0 = arith.constant 0 : i32
    return %arg0, %c0_i32 : i32, i32
  }
}

</mosaic_0001>

<bundles_post_ra>
// kernel: basic_mlp_forward.1
= control target key start
LH: loop header
LB: loop body
LE: loop exit
PB: predicated region body
PF: predicated region fallthrough
CT: control target
= control target key end

     0   :  { %vm49_vm0 = vcmask 1041408   ;;  %vm50_vm1 = vcmask 1042432   ;;  %v225_v1 = vmov 65535   ;;  %s299_s0 = inlined_call_operand.vmem [shape: f32[8,5], index: 0, kind: input, shape index: {}]   ;;  %s300_s1 = inlined_call_operand.vmem [shape: bf16[5,32], index: 1, kind: input, shape index: {}]   ;;  %s301_s2 = inlined_call_operand.vmem [shape: f32[1,32], index: 2, kind: input, shape index: {}]   ;;  %s302_s3 = inlined_call_operand.vmem [shape: bf16[32,32], index: 3, kind: input, shape index: {}]   ;;  %s303_s4 = inlined_call_operand.vmem [shape: f32[1,32], index: 4, kind: input, shape index: {}]   ;;  %s304_s5 = inlined_call_operand.vmem [shape: bf16[32,16], index: 5, kind: input, shape index: {}]   ;;  %s305_s6 = inlined_call_operand.vmem [shape: f32[1,16], index: 6, kind: input, shape index: {}]   ;;  %s306_s7 = inlined_call_operand.hbm [shape: f32[8,16], index: 7, kind: output, shape index: {}]  }
   0x1   :  { %v28_v0 = vld [vmem:[%s300_s1] sm:$0x7]  ;;  %v51_v2 = vsel %vm49_vm0, 4294967295, %v225_v1 }
   0x2   :  { %v40_v3 = vld [vmem:[%s299_s0] sm:$0xff]  ;;  %v52_v4 = vsel %vm50_vm1, %v51_v2, 0 }
   0x3   :  { %v54_v5 = vand.u32 %v52_v4, %v28_v0 }
   0x4   :  { %12 = vsyncpa [#allocation3], 0  ;;  %v41_v6 = vpack.c.bf16 %v40_v3, %v40_v3  ;;  %vm45_vm2 = vcmask 39936   ;;  %v189_v7 = vld [vmem:[%s302_s3 + $0x8] sm:$0xff]  ;;  %v188_v8 = vld [vmem:[%s302_s3] sm:$0xff]  ;;  %vm86_vm3 = vcmask 261120  }
   0x5   :  { %63 = vmatpush.bf16.msra.mxu0 %v54_v5  ;;  %96 = vmatpush.bf16.msra.mxu1 %v189_v7  ;;  %v194_v9 = vld [vmem:[%s301_s2] ss:$0 sm:$0xff]  ;;  %v191_v15 = vld [vmem:[%s304_s5 + $0x8] sm:$0xff]  ;;  %vm137_vm4 = vcmask 130048   ;;  %s160_s16 = sshll.u32 %s306_s7, 4  ;;  %s161_s16 = int_to_ptr.hbm [resolvable:$true] %s160_s16 }
   0x6   :  { %129 = vmatpush.bf16.msra.mxu2 %v191_v15  ;;  %v190_v16 = vld [vmem:[%s304_s5] sm:$0xff] }
   0x7   :  { %v195_v17 = vld [vmem:[%s303_s4] ss:$0 sm:$0xff]  ;;  %s226_s4 = smov [#allocation2]  }
   0x8   :  { %169 = vmatmul.msk.bf16.vlgmr.msra.gmra.mxu0 %vm45_vm2, %v41_v6  ;;  %v196_v23 = vld [vmem:[%s305_s6] ss:$0 sm:$0xff]  ;;  %s158_s5 = sshll.u32 %s226_s4, 4  ;;  %s159_s5 = int_to_ptr.vmem [resolvable:$true] %s158_s5 }
   0x9   :  { %97 = vmatpush.bf16.msra.mxu1 %v188_v8 }
   0xa   :  { %130 = vmatpush.bf16.msra.mxu2 %v190_v16 }
  0x85   :  { %v65_v10 = vpop.f32.mrf.mxu0 }
  0x86   :  { %v66_v11 = vadd.f32 %v194_v9, %v65_v10 }
  0x88   :  { %v69_v12 = vmax.f32 %v66_v11, 0.0 }
  0x8a   :  { %v70_v13 = vpack.c.bf16 %v69_v12, %v69_v12 }
  0x8c   :  { %178 = vmatmul.msk.bf16.vlgmr.msra.gmra.mxu1 %vm86_vm3, %v70_v13 }
  0x8d   :  { %v67_v14 = vpop.f32.mrf.mxu0 }
 0x109   :  { %v99_v18 = vpop.f32.mrf.mxu1 }
 0x10a   :  { %v100_v19 = vadd.f32 %v195_v17, %v99_v18 }
 0x10c   :  { %v103_v20 = vmax.f32 %v100_v19, 0.0 }
 0x10e   :  { %v104_v21 = vpack.c.bf16 %v103_v20, %v103_v20 }
 0x110   :  { %187 = vmatmul.msk.bf16.vlgmr.msra.gmra.mxu2 %vm86_vm3, %v104_v21 }
 0x111   :  { %v101_v22 = vpop.f32.mrf.mxu1 }
 0x193   :  { %v132_v24 = vpop.f32.mrf.mxu2 }
 0x194   :  { %v133_v25 = vadd.f32 %v196_v23, %v132_v24 }
 0x196   :  { %v136_v26 = vmul.f32 %v133_v25, %v133_v25 }
 0x198   :  { %v138_v27 = vsel %vm137_vm4, %v136_v26, 0.0 }
 0x199   :  { %139 = vadd.xlane.f32.xlu0 %v138_v27 }
 0x19b   :  { %v134_v28 = vpop.f32.mrf.mxu2 }
 0x20c   :  { %v140_v29 = vpop.xlane.xlu0 %139 }
 0x20d   :  { %197 = vrsqrt.f32 %v140_v29  ;;  %vm147_vm6 = vweird.f32 %v140_v29 }
 0x213   :  { %v198_v30 = vpop.eup %197 }
 0x214   :  { %v142_v31 = vmul.f32 %v198_v30, %v140_v29  ;;  %vm148_vm5 = vweird.f32 %v198_v30 }
 0x215   :  { %vm149_vm7 = vmor %vm147_vm6, %vm148_vm5 }
 0x216   :  { %v143_v32 = vmul.f32 %v198_v30, %v142_v31 }
 0x218   :  { %v144_v33 = vmul.f32 0.5, %v143_v32 }
 0x21a   :  { %v145_v34 = vsub.f32 1.5, %v144_v33 }
 0x21c   :  { %v146_v35 = vmul.f32 %v198_v30, %v145_v34 }
 0x21e   :  { %v150_v36 = vsel %vm149_vm7, %v198_v30, %v146_v35 }
 0x21f   :  { %v151_v37 = vmul.f32 %v150_v36, %v133_v25 }
 0x221   :  { %152 = vst.msk [vmem:[#allocation2] sm:$0xff] %vm137_vm4, %v151_v37 }
 0x222   :  { %163 = dma.vmem_to_hbm [thread:$0]  %s159_s5, 128, %s161_s16, [#allocation3]  }
 0x223   :  { %223 = dma.done.wait [#allocation3], 128  }
 0x224   :  { %224 = vsyncadd [#allocation3], 4294967168 }
 0x225   :  { %168 = vsyncpa [#allocation3], 1 }

</bundles_post_ra>
